<compile_context>
chip_gen: v7x
topology: tpu7x:2x2x1
jax: 0.10.0
libtpu: 0.0.40
codegen_flags: <defaults>
</compile_context>

<pallas_src>
import functools

import jax
import jax.numpy as jnp
from jax.experimental import pallas as pl
from jax.experimental.pallas import tpu as pltpu


def _dpn_loss_kernel(*refs, m, single_label, apply_threshold, assume_one_hot,
                     block_b, inner_steps, batch, need_mask):
    if single_label:
        u_ref, y_ref, tv_ref, o_ref, acc_ref = refs
        rc_ref = None
    else:
        u_ref, y_ref, tv_ref, rc_ref, o_ref, acc_ref = refs

    # Per-core partial-sum accumulator: zeroed at the start of each core pass.
    @pl.when(pl.program_id(1) == 0)
    def _():
        acc_ref[...] = jnp.zeros_like(acc_ref)

    u = u_ref[...].astype(jnp.float32)                         # (block_b, bit)

    if apply_threshold:
        # (|u| > m).float() * sign(u)  ==  select into {-1, 0, +1}
        u = jnp.where(u > m, 1.0, jnp.where(u < -m, -1.0, 0.0))

    tv_mx = tv_ref[...].astype(jnp.bfloat16)                   # +-1 exact in bf16

    if single_label:
        if assume_one_hot:
            # One-hot y: y @ tv is exactly the argmax gather, done on the MXU.
            onehot = y_ref[...].astype(jnp.bfloat16)
        else:
            # Tie-safe reconstruction of first-argmax one-hot (torch argmax).
            y = y_ref[...].astype(jnp.float32)
            n_class = y.shape[1]
            iota = jax.lax.broadcasted_iota(jnp.int32, y.shape, 1)
            row_max = jnp.max(y, axis=1, keepdims=True)
            first_idx = jnp.min(jnp.where(y == row_max, iota, n_class),
                                axis=1, keepdims=True)
            onehot = (iota == first_idx).astype(jnp.bfloat16)
        t = jnp.dot(onehot, tv_mx, preferred_element_type=jnp.float32)
        hinge = jnp.maximum(m - u * t, 0.0)
    else:
        # center_sum = y @ tv ; zeros replaced by random center.
        y_mx = y_ref[...].astype(jnp.bfloat16)                 # 0/1 exact in bf16
        center_sum = jnp.dot(y_mx, tv_mx, preferred_element_type=jnp.float32)
        rc = rc_ref[...].astype(jnp.float32)                   # (1, bit)
        center_sum = jnp.where(center_sum == 0.0, rc, center_sum)
        # t = 2*(cs>0)-1  =>  m - u*t == m - where(cs>0, u, -u)
        hinge = jnp.maximum(m - jnp.where(center_sum > 0.0, u, -u), 0.0)

    if need_mask:
        # Mask rows beyond B (partial last tile and/or the extra step created
        # by splitting an odd tile count across the 2 cores).
        tile = pl.program_id(0) * inner_steps + pl.program_id(1)
        rows = tile * block_b + jax.lax.broadcasted_iota(
            jnp.int32, (block_b, 1), 0)
        hinge = jnp.where(rows < batch, hinge, 0.0)

    # Deferred reduction: only a sublane reduce per step.
    acc_ref[...] += jnp.sum(hinge, axis=0, keepdims=True)

    @pl.when(pl.program_id(1) == inner_steps - 1)
    def _():
        # Lane reduce + scalar store once per core pass.
        o_ref[0, 0] = jnp.sum(acc_ref[...])


def _pick_block_b(B, bit, n_class, target_bytes=4 << 20, max_block=16384):
    """Batch tile sized so one step's u+y slab is ~target_bytes (HBM-roofline
    friendly); multiple of 8; capped so the double-buffered footprint stays
    far below v7x's scoped VMEM."""
    row_bytes = (bit + n_class) * 4
    bb = min(max_block, max(8, target_bytes // row_bytes))
    bb -= bb % 8
    bb = max(8, bb)
    if bb >= B:
        return B
    return bb


def dpn_loss(u, y, target_vectors, random_center=None, *, m, single_label,
             apply_threshold, assume_one_hot=False, block_b=None,
             num_cores=2):
    """DPN hinge loss.  Native-dtype inputs; casting happens inside the kernel."""
    B, bit = u.shape
    n_class = y.shape[1]

    if block_b is None:
        block_b = _pick_block_b(B, bit, n_class)
    block_b = min(int(block_b), B)
    if block_b < B:
        block_b = max(8, block_b - block_b % 8)

    num_tiles = pl.cdiv(B, block_b)
    ncores = num_cores if num_tiles >= 2 else 1     # leading axis for v7x 2-TC
    inner = pl.cdiv(num_tiles, ncores)
    need_mask = (ncores * inner * block_b) != B

    if ncores * inner == num_tiles:
        tile_of = lambda c, i: c * inner + i
    else:
        # Extra padded step re-reads the last tile; its rows are masked out.
        tile_of = lambda c, i: jnp.minimum(c * inner + i, num_tiles - 1)

    kernel = functools.partial(
        _dpn_loss_kernel,
        m=float(m),
        single_label=bool(single_label),
        apply_threshold=bool(apply_threshold),
        assume_one_hot=bool(assume_one_hot),
        block_b=int(block_b),
        inner_steps=int(inner),
        batch=int(B),
        need_mask=bool(need_mask),
    )

    in_specs = [
        pl.BlockSpec((block_b, bit), lambda c, i: (tile_of(c, i), 0)),     # u
        pl.BlockSpec((block_b, n_class), lambda c, i: (tile_of(c, i), 0)), # y
        pl.BlockSpec((n_class, bit), lambda c, i: (0, 0)),                 # tv
    ]
    args = [u, y, target_vectors]
    if not single_label:
        if random_center is None:
            raise ValueError("random_center is required for the multi-label path")
        if random_center.ndim == 1:
            random_center = random_center.reshape(1, -1)
        in_specs.append(pl.BlockSpec((1, bit), lambda c, i: (0, 0)))       # rc
        args.append(random_center)

    partials = pl.pallas_call(
        kernel,
        out_shape=jax.ShapeDtypeStruct((ncores, 1), jnp.float32),
        grid=(ncores, inner),
        in_specs=in_specs,
        out_specs=pl.BlockSpec((1, 1), lambda c, i: (c, 0),
                               memory_space=pltpu.MemorySpace.SMEM),
        scratch_shapes=[pltpu.VMEM((1, bit), jnp.float32)],
        compiler_params=pltpu.CompilerParams(
            dimension_semantics=("parallel", "arbitrary"),
            vmem_limit_bytes=32 * 1024 * 1024),
    )(*args)

    return jnp.sum(partials) * (1.0 / float(B * bit))


def get_target_vectors(key, n_class, bit, p=0.5):
    """Deterministic analogue of DPNLoss.get_target_vectors: per class,
    exactly int(bit*p) entries set to -1, the rest +1."""
    neg = int(bit * p)
    rows = []
    for k in range(n_class):
        perm = jax.random.permutation(jax.random.fold_in(key, k), bit)
        row = jnp.ones((bit,), jnp.float32).at[perm[:neg]].set(-1.0)
        rows.append(row)
    return jnp.stack(rows)


@functools.partial(jax.jit,
                   static_argnames=("m", "single_label", "apply_threshold"),
                   donate_argnums=(3, 4))
def dpn_forward(u, y, ind, U, Y, target_vectors, random_center, *,
                m, single_label, apply_threshold):
    """Mirrors DPNLoss.forward: in-place (donated) state writes + Pallas loss."""
    # TODO(synk): fuse into the kernel (scalar-prefetch ind + io aliasing) to
    # avoid the second HBM read of u/y by this scatter.
    U = U.at[ind].set(u.astype(U.dtype))            # self.U[ind, :] = u.data
    Y = Y.at[ind].set(y.astype(Y.dtype))            # self.Y[ind, :] = y.float()
    loss = dpn_loss(u, y, target_vectors, random_center,
                    m=m, single_label=single_label,
                    apply_threshold=apply_threshold)
    return loss, U, Y


def _dpn_loss_ref(u, y, tv, rc, *, m, single_label, apply_threshold):
    """Pure-JAX reference of the torch forward (for correctness check)."""
    u = u.astype(jnp.float32)
    if apply_threshold:
        u = (jnp.abs(u) > m).astype(jnp.float32) * jnp.sign(u)
    if single_label:
        t = tv[jnp.argmax(y, axis=1)]
    else:
        cs = y.astype(jnp.float32) @ tv
        cs = jnp.where(cs == 0.0, rc.reshape(1, -1), cs)
        t = 2.0 * (cs > 0.0).astype(jnp.float32) - 1.0
    return jnp.mean(jnp.maximum(m - u * t, 0.0))


def _check(a, b, what):
    assert jnp.allclose(a, b, rtol=1e-5, atol=1e-5), (what, float(a), float(b))


if __name__ == "__main__":
    key = jax.random.PRNGKey(0)
    B, bit, n_class, num_train = 8, 32, 16, 64
    m = 0.1

    k_tv, k_rc, k_u, k_lbl, k_multi = jax.random.split(key, 5)

    target_vectors = get_target_vectors(k_tv, n_class, bit, p=0.5)
    # Hoisted once: (1, bit) 0/1 random center, as in the module's buffer.
    random_center = jax.random.randint(k_rc, (1, bit), 0, 2).astype(jnp.float32)

    u = jax.random.normal(k_u, (B, bit), jnp.float32)
    labels = jax.random.randint(k_lbl, (B,), 0, n_class)
    y_single = jax.nn.one_hot(labels, n_class, dtype=jnp.float32)
    y_multi = (jax.random.uniform(k_multi, (B, n_class)) < 0.3).astype(jnp.float32)
    ind = jnp.arange(B)

    U0 = jnp.zeros((num_train, bit), jnp.float32)
    Y0 = jnp.zeros((num_train, n_class), jnp.float32)

    # Single-label dataset path (is_single_label=True), no '-T' thresholding.
    loss_s, U1, Y1 = dpn_forward(u, y_single, ind, U0, Y0,
                                 target_vectors, random_center,
                                 m=m, single_label=True, apply_threshold=False)
    # Multi-label path (nuswide_21/coco) with '-T' thresholding; state chained
    # (U1/Y1 are donated, emulating the module's in-place buffers).
    loss_m, U2, Y2 = dpn_forward(u, y_multi, ind, U1, Y1,
                                 target_vectors, random_center,
                                 m=m, single_label=False, apply_threshold=True)
    jax.block_until_ready((loss_s, loss_m, U2, Y2))

    ref_s = _dpn_loss_ref(u, y_single, target_vectors, random_center,
                          m=m, single_label=True, apply_threshold=False)
    ref_m = _dpn_loss_ref(u, y_multi, target_vectors, random_center,
                          m=m, single_label=False, apply_threshold=True)
    _check(loss_s, ref_s, "single")
    _check(loss_m, ref_m, "multi")

    # Masked-tail / dual-core-grid paths: B not a multiple of block_b.
    B2 = 200
    k_u2, k_l2, k_m2 = jax.random.split(jax.random.fold_in(key, 7), 3)
    u2 = jax.random.normal(k_u2, (B2, bit), jnp.float32)
    y2s = jax.nn.one_hot(jax.random.randint(k_l2, (B2,), 0, n_class),
                         n_class, dtype=jnp.float32)
    y2m = (jax.random.uniform(k_m2, (B2, n_class)) < 0.3).astype(jnp.float32)

    # block_b=64: 4 tiles, even split across the 2-wide parallel axis.
    tail_s = dpn_loss(u2, y2s, target_vectors, random_center,
                      m=m, single_label=True, apply_threshold=False,
                      block_b=64)
    # block_b=72: 3 tiles, exercises the clamped extra step on the 2nd core.
    tail_m = dpn_loss(u2, y2m, target_vectors, random_center,
                      m=m, single_label=False, apply_threshold=True,
                      block_b=72)
    jax.block_until_ready((tail_s, tail_m))

    ref2_s = _dpn_loss_ref(u2, y2s, target_vectors, random_center,
                           m=m, single_label=True, apply_threshold=False)
    ref2_m = _dpn_loss_ref(u2, y2m, target_vectors, random_center,
                           m=m, single_label=False, apply_threshold=True)
    _check(tail_s, ref2_s, "single-tail")
    _check(tail_m, ref2_m, "multi-tail")

    print("KERNEL_OK")
</pallas_src>

<mosaic_0001>
module attributes {stable_mosaic.version = 11 : i64} {
  func.func @_dpn_loss_kernel(%arg0: i32, %arg1: i32, %arg2: memref<8x32xf32, #tpu.memory_space<vmem>>, %arg3: memref<8x16xf32, #tpu.memory_space<vmem>>, %arg4: memref<16x32xf32, #tpu.memory_space<vmem>>, %arg5: memref<1x1xf32, #tpu.memory_space<smem>>, %arg6: memref<1x32xf32, #tpu.memory_space<vmem>>) attributes {dimension_semantics = [#tpu.dimension_semantics<parallel>, #tpu.dimension_semantics<arbitrary>], iteration_bounds = array<i64: 1, 1>, scalar_prefetch = 0 : i64, scratch_operands = 1 : i64, tpu.core_type = #tpu.core_type<tc>, window_params = [{transform_indices = @transform_0, window_bounds = array<i64: 8, 32>}, {transform_indices = @transform_1, window_bounds = array<i64: 8, 16>}, {pipeline_mode = #tpu.pipeline_mode<synchronous>, transform_indices = @transform_2, window_bounds = array<i64: 16, 32>}, {transform_indices = @transform_3, window_bounds = array<i64: 1, 1>}]} {
    %c0_i32 = arith.constant 0 : i32
    %0 = arith.cmpi eq, %arg1, %c0_i32 : i32
    %1 = arith.extui %0 : i1 to i32
    %c0_i32_0 = arith.constant 0 : i32
    %2 = arith.cmpi ne, %1, %c0_i32_0 : i32
    scf.if %2 {
      %cst_17 = arith.constant 0.000000e+00 : f32
      %35 = vector.broadcast %cst_17 : f32 to vector<1x32xf32>
      %c0_18 = arith.constant 0 : index
      %c0_19 = arith.constant 0 : index
      %36 = vector.load %arg6[%c0_18, %c0_19] : memref<1x32xf32, #tpu.memory_space<vmem>>, vector<1x32xf32>
      tpu.vector_store %arg6[%c0_18, %c0_19], %35 {strides = array<i32>} : memref<1x32xf32, #tpu.memory_space<vmem>>, vector<1x32xf32>,
    } else {
    }
    %c0 = arith.constant 0 : index
    %c0_1 = arith.constant 0 : index
    %3 = vector.load %arg2[%c0, %c0_1] : memref<8x32xf32, #tpu.memory_space<vmem>>, vector<8x32xf32>
    %c0_2 = arith.constant 0 : index
    %c0_3 = arith.constant 0 : index
    %4 = vector.load %arg4[%c0_2, %c0_3] : memref<16x32xf32, #tpu.memory_space<vmem>>, vector<16x32xf32>
    %5 = arith.truncf %4 : vector<16x32xf32> to vector<16x32xbf16>
    %c0_4 = arith.constant 0 : index
    %c0_5 = arith.constant 0 : index
    %6 = vector.load %arg3[%c0_4, %c0_5] : memref<8x16xf32, #tpu.memory_space<vmem>>, vector<8x16xf32>
    %7 = tpu.iota {dimensions = array<i32: 1>} : vector<8x16xi32>
    %cst = arith.constant dense<0xFF800000> : vector<8xf32>
    %8 = vector.multi_reduction <maximumf>, %6, %cst [1] : vector<8x16xf32> to vector<8xf32>
    %9 = vector.shape_cast %8 : vector<8xf32> to vector<8x1xf32>
    %10 = vector.broadcast %9 : vector<8x1xf32> to vector<8x16xf32>
    %11 = arith.cmpf oeq, %6, %10 : vector<8x16xf32>
    %c16_i32 = arith.constant 16 : i32
    %12 = vector.broadcast %c16_i32 : i32 to vector<8x16xi32>
    %13 = arith.select %11, %7, %12 : vector<8x16xi1>, vector<8x16xi32>
    %cst_6 = arith.constant dense<2147483647> : vector<8xi32>
    %14 = vector.multi_reduction <minsi>, %13, %cst_6 [1] : vector<8x16xi32> to vector<8xi32>
    %15 = vector.shape_cast %14 : vector<8xi32> to vector<8x1xi32>
    %16 = vector.broadcast %15 : vector<8x1xi32> to vector<8x16xi32>
    %17 = arith.cmpi eq, %7, %16 : vector<8x16xi32>
    %18 = arith.extui %17 : vector<8x16xi1> to vector<8x16xi32>
    %19 = arith.sitofp %18 : vector<8x16xi32> to vector<8x16xf32>
    %20 = arith.truncf %19 : vector<8x16xf32> to vector<8x16xbf16>
    %cst_7 = arith.constant dense<0.000000e+00> : vector<8x32xf32>
    %21 = tpu.matmul %20, %5, %cst_7 {dimension_numbers = #tpu.dot_dimension_numbers<[1], [0], [0], [1], [0, 0, 1, 1], [], []>} : vector<8x16xbf16>, vector<16x32xbf16>, vector<8x32xf32> -> vector<8x32xf32>
    %22 = arith.mulf %3, %21 : vector<8x32xf32>
    %cst_8 = arith.constant 1.000000e-01 : f32
    %23 = vector.broadcast %cst_8 : f32 to vector<8x32xf32>
    %24 = arith.subf %23, %22 : vector<8x32xf32>
    %cst_9 = arith.constant 0.000000e+00 : f32
    %25 = vector.broadcast %cst_9 : f32 to vector<8x32xf32>
    %26 = arith.maximumf %24, %25 : vector<8x32xf32>
    %c0_10 = arith.constant 0 : index
    %c0_11 = arith.constant 0 : index
    %27 = vector.load %arg6[%c0_10, %c0_11] : memref<1x32xf32, #tpu.memory_space<vmem>>, vector<1x32xf32>
    %cst_12 = arith.constant dense<0.000000e+00> : vector<32xf32>
    %28 = vector.multi_reduction <add>, %26, %cst_12 [0] : vector<8x32xf32> to vector<32xf32>
    %29 = vector.shape_cast %28 : vector<32xf32> to vector<1x32xf32>
    %30 = arith.addf %27, %29 : vector<1x32xf32>
    %c0_13 = arith.constant 0 : index
    %c0_14 = arith.constant 0 : index
    %31 = vector.load %arg6[%c0_13, %c0_14] : memref<1x32xf32, #tpu.memory_space<vmem>>, vector<1x32xf32>
    tpu.vector_store %arg6[%c0_13, %c0_14], %30 {strides = array<i32>} : memref<1x32xf32, #tpu.memory_space<vmem>>, vector<1x32xf32>,
    %c0_i32_15 = arith.constant 0 : i32
    %32 = arith.cmpi eq, %arg1, %c0_i32_15 : i32
    %33 = arith.extui %32 : i1 to i32
    %c0_i32_16 = arith.constant 0 : i32
    %34 = arith.cmpi ne, %33, %c0_i32_16 : i32
    scf.if %34 {
      %c0_17 = arith.constant 0 : index
      %c0_18 = arith.constant 0 : index
      %35 = vector.load %arg6[%c0_17, %c0_18] : memref<1x32xf32, #tpu.memory_space<vmem>>, vector<1x32xf32>
      %36 = vector.shape_cast %35 : vector<1x32xf32> to vector<1x1x32xf32>
      %cst_19 = arith.constant dense<0.000000e+00> : vector<1xf32>
      %37 = vector.multi_reduction <add>, %36, %cst_19 [1, 2] : vector<1x1x32xf32> to vector<1xf32>
      %38 = vector.shape_cast %37 : vector<1xf32> to vector<1x1x1xf32>
      %39 = vector.extract %38[0, 0, 0] : f32 from vector<1x1x1xf32>
      %c0_20 = arith.constant 0 : index
      %c0_21 = arith.constant 0 : index
      %40 = memref.load %arg5[%c0_20, %c0_21] : memref<1x1xf32, #tpu.memory_space<smem>>
      memref.store %39, %arg5[%c0_20, %c0_21] : memref<1x1xf32, #tpu.memory_space<smem>>
    } else {
    }
    return
  }
  func.func @transform_0(%arg0: i32, %arg1: i32) -> (i32, i32) {
    %c1_i32 = arith.constant 1 : i32
    %0 = arith.muli %arg0, %c1_i32 : i32
    %1 = arith.addi %0, %arg1 : i32
    %c0_i32 = arith.constant 0 : i32
    %c0_i32_0 = arith.constant 0 : i32
    return %1, %c0_i32 : i32, i32
  }
  func.func @transform_1(%arg0: i32, %arg1: i32) -> (i32, i32) {
    %c1_i32 = arith.constant 1 : i32
    %0 = arith.muli %arg0, %c1_i32 : i32
    %1 = arith.addi %0, %arg1 : i32
    %c0_i32 = arith.constant 0 : i32
    %c0_i32_0 = arith.constant 0 : i32
    return %1, %c0_i32 : i32, i32
  }
  func.func @transform_2(%arg0: i32, %arg1: i32) -> (i32, i32) {
    %c0_i32 = arith.constant 0 : i32
    %c0_i32_0 = arith.constant 0 : i32
    %c0_i32_1 = arith.constant 0 : i32
    return %c0_i32, %c0_i32_0 : i32, i32
  }
  func.func @transform_3(%arg0: i32, %arg1: i32) -> (i32, i32) {
    %c0_i32 = arith.constant 0 : i32
    %c0_i32_0 = arith.constant 0 : i32
    return %arg0, %c0_i32 : i32, i32
  }
}

</mosaic_0001>

<bundles_post_ra>
// kernel: dpn_forward.1
= control target key start
LH: loop header
LB: loop body
LE: loop exit
PB: predicated region body
PF: predicated region fallthrough
CT: control target
= control target key end

     0   :  { %vm63_vm0 = vcmask 130048   ;;  %s267_s0 = inlined_call_operand.vmem [shape: f32[8,32], index: 0, kind: input, shape index: {}]   ;;  %s268_s1 = inlined_call_operand.vmem [shape: f32[8,16], index: 1, kind: input, shape index: {}]   ;;  %s269_s2 = inlined_call_operand.vmem [shape: f32[16,32], index: 2, kind: input, shape index: {}]   ;;  %s270_s3 = inlined_call_operand.hbm [shape: f32[1,1], index: 3, kind: output, shape index: {}]  }
   0x1   :  { %v60_v0 = vld [vmem:[%s268_s1] sm:$0xff] }
   0x2   :  { %8 = vsyncpa [#allocation4], 0  ;;  %v64_v1 = vsel %vm63_vm0, %v60_v0, -inf  ;;  %v61_v2 = vlaneseq  ;;  %v57_v13 = vld [vmem:[%s269_s2] sm:$0xff]  ;;  %v58_v14 = vld [vmem:[%s269_s2 + $0x8] sm:$0xff]  ;;  %v214_v16 = vmov 0.0  }
   0x3   :  { %65 = vmax.xlane.f32.xlu0 %v64_v1  ;;  %v59_v15 = vpack.c.bf16 %v58_v14, %v57_v13  ;;  %191 = vmatprep.subr.bf16.mxu0 %v214_v16  ;;  %vm215_vm3 = vmmov 0   ;;  %vm54_vm5 = vcmask 253952   ;;  %v56_v24 = vld [vmem:[%s267_s0] sm:$0xff]  ;;  %vm135_vm6 = vcmask 261120   ;;  %s202_s20 = scalar_lea.hbm %s270_s3, 16 }
   0x4   :  { %v62_v3 = vand.u32 127, %v61_v2  ;;  %193 = vmatprep.mubr.msk.bf16.mxu0 %vm215_vm3, %v214_v16  ;;  %55 = vst.msk [vmem:[#allocation2] sm:$0x1] %vm54_vm5, %v214_v16  ;;  %p203_p0 = scmp.ne.s32.totalorder %s270_s3, %s202_s20  ;;  %p206_p1 = scmp.lt.u32.totalorder %s202_s20, %s270_s3 }
   0x5   :  { %192 = vmatpush3.bf16.msra.mxu0 %v59_v15 }
   0x6   :  { %p208_p2 = pnand %p206_p1, %p203_p0 }
   0xb   :  { %v134_v38 = vld [vmem:[#allocation2] sm:$0x1] }
  0x90   :  { %v66_v4 = vpop.xlane.xlu0 %65 }
  0x91   :  { %vm67_vm1 = vcmp.eq.f32.partialorder %v60_v0, %v66_v4 }
  0x92   :  { %v68_v5 = vsel %vm67_vm1, %v62_v3, 16 }
  0x93   :  { %v69_v6 = vsel %vm63_vm0, %v68_v5, 2147483647 }
  0x94   :  { %v71_v7 = vshra.s32 %v69_v6, 16  ;;  %v70_v9 = vand.u32 65535, %v69_v6 }
  0x96   :  { %v73_v8 = vcvt.s32.f32 %v71_v7  ;;  %v72_v11 = vcvt.s32.f32 %v70_v9 }
  0x98   :  { %74 = vmin.xlane.f32.xlu0 %v73_v8 }
 0x125   :  { %v75_v10 = vpop.xlane.xlu0 %74 }
 0x126   :  { %vm76_vm2 = vcmp.eq.f32.partialorder %v73_v8, %v75_v10  ;;  %v81_v17 = vcvt.f32.s32 %v75_v10 }
 0x127   :  { %v77_v12 = vsel %vm76_vm2, %v72_v11, inf }
 0x128   :  { %78 = vmin.xlane.f32.xlu1 %v77_v12  ;;  %v82_v19 = vshll.u32 %v81_v17, 16 }
 0x1b5   :  { %v79_v18 = vpop.xlane.xlu1 %78 }
 0x1b6   :  { %v80_v20 = vcvt.f32.s32 %v79_v18 }
 0x1b8   :  { %v83_v21 = vadd.s32 %v82_v19, %v80_v20 }
 0x1ba   :  { %vm84_vm4 = vcmp.eq.s32.totalorder %v62_v3, %v83_v21 }
 0x1bb   :  { %v187_v22 = vsel %vm84_vm4, 1.0, %v214_v16 }
 0x1bc   :  { %v87_v23 = vpack.c.bf16 %v187_v22, %v187_v22 }
 0x1be   :  { %194 = vmatmul.mubr.msk.bf16.vlgmr.msra.gmra.mrb[0].mxu0 %vm63_vm0, %v87_v23 }
 0x291   :  { %v125_v25 = vpop.f32.mrb[0].mxu0 }
 0x292   :  { %v131_v26 = vmul.f32 %v125_v25, %v56_v24  ;;  %v195_v27 = vpop.f32.mrb[1].mxu0 }
 0x293   :  { %v128_v28 = vpop.f32.mrb[2].mxu0 }
 0x294   :  { %v132_v29 = vsub.f32 0.1, %v131_v26  ;;  %v196_v30 = vpop.f32.mrb[3].mxu0 }
 0x296   :  { %v133_v31 = vmax.f32 %v132_v29, 0.0 }
 0x298   :  { %v136_v32 = vsel %vm135_vm6, %v133_v31, 0.0 }
 0x299   :  { %v137_v33 = vrot.slane %v136_v32, 4 }
 0x29b   :  { %v138_v34 = vadd.f32 %v137_v33, %v136_v32 }
 0x29d   :  { %v139_v35 = vrot.slane %v138_v34, 2 }
 0x29f   :  { %v140_v36 = vadd.f32 %v139_v35, %v138_v34 }
 0x2a1   :  { %v141_v37 = vrot.slane %v140_v36, 1 }
 0x2a3   :  { %v142_v39 = vadd.f32 %v141_v37, %v140_v36 }
 0x2a5   :  { %v143_v40 = vadd.f32 %v142_v39, %v134_v38 }
 0x2a7   :  { %145 = vst.msk [vmem:[#allocation2] sm:$0x1] %vm54_vm5, %v143_v40 }
 0x2ae   :  { %v149_v41 = vld [vmem:[#allocation2] sm:$0x1] }
 0x2af   :  { %v150_v42 = vsel %vm54_vm5, %v149_v41, 0.0 }
 0x2b0   :  { %151 = vadd.xlane.f32.xlu1 %v150_v42 }
 0x33d   :  { %v152_v43 = vpop.xlane.xlu1 %151 }
 0x33e   :  { %v153_v44 = vrot.slane %v152_v43, 4 }
 0x340   :  { %v154_v45 = vadd.f32 %v153_v44, %v152_v43 }
 0x342   :  { %v155_v46 = vrot.slane %v154_v45, 2 }
 0x344   :  { %v156_v47 = vadd.f32 %v155_v46, %v154_v45 }
 0x346   :  { %v157_v48 = vrot.slane %v156_v47, 1 }
 0x348   :  { %v158_v49 = vadd.f32 %v157_v48, %v156_v47 }
 0x34a   :  { %197 = vpush %v158_v49 }
 0x37b   :  { %s198_s0 = spop %197 }
 0x37c   :  { %161 = sst [smem:[#allocation3]] %s198_s0 }
 0x37d   :  { %211 = shalt.err (!%p208_p2)
}
 0x37e   :  { %s216_s25 = smov [#allocation3]  }
 0x37f   :  { %169 = dma.smem_to_hbm %s216_s25, 16, %s270_s3, [#allocation4]  }
 0x380   :  { %212 = dma.done.wait [#allocation4], 16  }
 0x381   :  { %213 = vsyncadd [#allocation4], 4294967280 }
 0x382   :  { %173 = sfence }
 0x383   :  { %174 = vsyncpa [#allocation4], 1 }

</bundles_post_ra>
